<compile_context>
chip_gen: v6e
topology: v6e:2x2x1
jax: 0.10.0
libtpu: 0.0.40
codegen_flags: <defaults>
</compile_context>

<pallas_src>
import functools

import jax
import jax.numpy as jnp
from jax.experimental import pallas as pl
from jax.experimental.pallas import tpu as pltpu


# ----------------------------- kernels ------------------------------------ #

def fused_gcn_kernel(adj_ref, x_ref, wh_ref, wo_ref, o_ref):
    """Whole forward in one kernel; everything VMEM-resident (small graphs)."""
    adj = adj_ref[...].astype(jnp.bfloat16)                        # int8 -> bf16
    deg = jnp.sum(adj, axis=1, dtype=jnp.float32, keepdims=True)   # f32 accumulate
    inv_deg = pl.reciprocal(jnp.maximum(deg, 1.0), approx=True)

    z1 = jnp.dot(x_ref[...], wh_ref[...],
                 preferred_element_type=jnp.float32)               # x @ W_h^T
    h = jnp.dot(adj, z1.astype(jnp.bfloat16),
                preferred_element_type=jnp.float32) * inv_deg      # propagate 1
    z2 = jnp.dot(h.astype(jnp.bfloat16), wo_ref[...],
                 preferred_element_type=jnp.float32)               # @ W_o^T
    out = jnp.dot(adj, z2.astype(jnp.bfloat16),
                  preferred_element_type=jnp.float32) * inv_deg    # propagate 2
    o_ref[...] = out.astype(o_ref.dtype)


def transform_kernel(x_ref, w_ref, o_ref):
    """z = x @ W  (feature transform; weights resident via constant index_map)."""
    o_ref[...] = jnp.dot(
        x_ref[...], w_ref[...], preferred_element_type=jnp.float32
    ).astype(o_ref.dtype)


def propagate_matmul_kernel(adj_ref, z_ref, w_ref, o_ref, rdeg_ref,
                            acc_ref, deg_ref):
    """o = ((adj @ z) * 1/deg) @ W; also emits 1/deg for reuse by layer 2."""
    k = pl.program_id(1)

    @pl.when(k == 0)
    def _():
        acc_ref[...] = jnp.zeros_like(acc_ref)
        deg_ref[...] = jnp.zeros_like(deg_ref)

    adj = adj_ref[...].astype(jnp.bfloat16)                        # int8 -> bf16
    deg_ref[...] += jnp.sum(adj, axis=1, dtype=jnp.float32, keepdims=True)
    acc_ref[...] += jnp.dot(adj, z_ref[...],
                            preferred_element_type=jnp.float32)

    @pl.when(k == pl.num_programs(1) - 1)
    def _():
        rdeg = pl.reciprocal(jnp.maximum(deg_ref[...], 1.0), approx=True)
        rdeg_ref[...] = rdeg
        h = (acc_ref[...] * rdeg).astype(jnp.bfloat16)
        o_ref[...] = jnp.dot(h, w_ref[...],
                             preferred_element_type=jnp.float32).astype(o_ref.dtype)


def propagate_kernel(adj_ref, z_ref, rdeg_ref, o_ref, acc_ref):
    """o = (adj @ z) * rdeg, with rdeg precomputed by layer 1 (no re-reduce)."""
    k = pl.program_id(1)

    @pl.when(k == 0)
    def _():
        acc_ref[...] = jnp.zeros_like(acc_ref)

    adj = adj_ref[...].astype(jnp.bfloat16)                        # int8 -> bf16
    acc_ref[...] += jnp.dot(adj, z_ref[...],
                            preferred_element_type=jnp.float32)

    @pl.when(k == pl.num_programs(1) - 1)
    def _():
        o_ref[...] = (acc_ref[...] * rdeg_ref[...]).astype(o_ref.dtype)


# ----------------------------- wrapper ------------------------------------- #

def _round_up(x, m):
    return ((x + m - 1) // m) * m


def _pick_tile(request, n_pad, min_blocks=1):
    """Largest multiple of 128 that divides n_pad, is <= request, and leaves at
    least `min_blocks` blocks.  Always returns a valid divisor (128 fallback)."""
    request = max(128, min(request, n_pad))
    best = 128
    t = 128
    while t <= request:
        if n_pad % t == 0 and n_pad // t >= min_blocks:
            best = t
        t += 128
    return best


def _gcn_tiled(adj_p, x_p, wh_p, wo_p, n_pad, f_in, f_hid, f_out, tm, tk):
    """Three-call tiled path for graphs too large to keep fully VMEM-resident."""
    bf = jnp.bfloat16
    # Exact divisors of n_pad (fixes the "dropped rows" padding bug); keep
    # nm >= 2 when possible so the 'parallel' axis spans both v7x TensorCores.
    tm = _pick_tile(tm, n_pad, min_blocks=2 if n_pad >= 256 else 1)
    tk = _pick_tile(tk, n_pad, min_blocks=1)
    nm = n_pad // tm
    nk = n_pad // tk

    # --- z1 = x @ W_h^T (feature transform first: reassociated matmuls) -----
    z1 = pl.pallas_call(
        transform_kernel,
        out_shape=jax.ShapeDtypeStruct((n_pad, f_hid), bf),
        grid_spec=pltpu.PrefetchScalarGridSpec(
            num_scalar_prefetch=0,
            grid=(nm,),
            in_specs=[
                pl.BlockSpec((tm, f_in), lambda i: (i, 0)),
                pl.BlockSpec((f_in, f_hid), lambda i: (0, 0)),   # weights resident
            ],
            out_specs=pl.BlockSpec((tm, f_hid), lambda i: (i, 0)),
        ),
        compiler_params=pltpu.CompilerParams(
            dimension_semantics=("parallel",)),
    )(x_p, wh_p)

    # --- z2 = ((adj @ z1) * 1/deg) @ W_o^T ; also emits 1/deg ---------------
    z2, rdeg = pl.pallas_call(
        propagate_matmul_kernel,
        out_shape=(jax.ShapeDtypeStruct((n_pad, f_out), bf),
                   jax.ShapeDtypeStruct((n_pad, 1), jnp.float32)),
        grid_spec=pltpu.PrefetchScalarGridSpec(
            num_scalar_prefetch=0,
            grid=(nm, nk),
            in_specs=[
                pl.BlockSpec((tm, tk), lambda i, k: (i, k)),        # int8 adjacency
                pl.BlockSpec((tk, f_hid), lambda i, k: (k, 0)),
                pl.BlockSpec((f_hid, f_out), lambda i, k: (0, 0)),  # weights resident
            ],
            out_specs=(pl.BlockSpec((tm, f_out), lambda i, k: (i, 0)),
                       pl.BlockSpec((tm, 1), lambda i, k: (i, 0))),
            scratch_shapes=[
                pltpu.VMEM((tm, f_hid), jnp.float32),   # adj@z1 accumulator
                pltpu.VMEM((tm, 1), jnp.float32),       # degree accumulator
            ],
        ),
        compiler_params=pltpu.CompilerParams(
            dimension_semantics=("parallel", "arbitrary")),
    )(adj_p, z1, wo_p)

    # --- out = (adj @ z2) * 1/deg  (layer-2 propagate; reuses rdeg) ----------
    out_p = pl.pallas_call(
        propagate_kernel,
        out_shape=jax.ShapeDtypeStruct((n_pad, f_out), jnp.float32),
        grid_spec=pltpu.PrefetchScalarGridSpec(
            num_scalar_prefetch=0,
            grid=(nm, nk),
            in_specs=[
                pl.BlockSpec((tm, tk), lambda i, k: (i, k)),
                pl.BlockSpec((tk, f_out), lambda i, k: (k, 0)),
                pl.BlockSpec((tm, 1), lambda i, k: (i, 0)),         # precomputed 1/deg
            ],
            out_specs=pl.BlockSpec((tm, f_out), lambda i, k: (i, 0)),
            scratch_shapes=[pltpu.VMEM((tm, f_out), jnp.float32)],
        ),
        compiler_params=pltpu.CompilerParams(
            dimension_semantics=("parallel", "arbitrary")),
    )(adj_p, z2, rdeg)

    return out_p


def gcn_forward(x, edges, w_hidden, w_out, *, tm=512, tk=512, mode="auto"):
    """x: [N, sz_in] f32, edges: [E, >=2] int32,
       w_hidden: [sz_hid, sz_in] (PyTorch Linear layout), w_out: [sz_out, sz_hid].
       mode: "auto" | "fused" | "tiled"."""
    n, sz_in = x.shape
    sz_hid = w_hidden.shape[0]
    sz_out = w_out.shape[0]

    # --- pad so every block is (8,128)-aligned and every output lane-dense ---
    f_in = _round_up(sz_in, 128)
    f_hid = _round_up(sz_hid, 128)
    f_out = _round_up(sz_out, 128)
    n_pad = _round_up(n, 128)

    bf = jnp.bfloat16

    # --- glue: symmetric adjacency, built directly as padded int8 (0/1) ------
    e = edges[:, :2].astype(jnp.int32)
    adj_p = jnp.zeros((n_pad, n_pad), jnp.int8)
    adj_p = adj_p.at[e[:, 0], e[:, 1]].set(jnp.int8(1))
    adj_p = adj_p.at[e[:, 1], e[:, 0]].set(jnp.int8(1))

    x_p = jnp.pad(x.astype(bf), ((0, n_pad - n), (0, f_in - sz_in)))
    wh_p = jnp.pad(w_hidden.T.astype(bf), ((0, f_in - sz_in), (0, f_hid - sz_hid)))
    wo_p = jnp.pad(w_out.T.astype(bf), ((0, f_hid - sz_hid), (0, f_out - sz_out)))

    # Rough VMEM working-set estimate for the fully fused single-call path
    # (int8 adj + bf16 widened copy + x/z1/h/z2/out + weights).
    fused_bytes = (3 * n_pad * n_pad
                   + n_pad * (2 * f_in + 8 * f_hid + 8 * f_out)
                   + 2 * (f_in * f_hid + f_hid * f_out))
    use_fused = (mode == "fused") or (mode == "auto" and fused_bytes <= 8 << 20)

    if use_fused:
        # One launch, zero intermediate HBM traffic (everything VMEM-resident).
        out_p = pl.pallas_call(
            fused_gcn_kernel,
            out_shape=jax.ShapeDtypeStruct((n_pad, f_out), jnp.float32),
        )(adj_p, x_p, wh_p, wo_p)
    else:
        out_p = _gcn_tiled(adj_p, x_p, wh_p, wo_p,
                           n_pad, f_in, f_hid, f_out, tm, tk)

    return out_p[:n, :sz_out]


# ----------------------------- reference / demo ----------------------------- #

def _reference(x, edges, w_hidden, w_out):
    n = x.shape[0]
    e = edges[:, :2]
    adj = jnp.zeros((n, n), jnp.float32)
    adj = adj.at[e[:, 0], e[:, 1]].set(1.0)
    adj = adj.at[e[:, 1], e[:, 0]].set(1.0)
    deg = adj.sum(axis=1, keepdims=True)
    h = (1.0 / deg * adj) @ x @ w_hidden.T
    return (1.0 / deg * adj) @ h @ w_out.T


def _ring_edges(n):
    """Ring graph + a few chords so every node has degree >= 2."""
    ring = jnp.stack([jnp.arange(n), (jnp.arange(n) + 1) % n], axis=1)
    step = max(1, n // 4)
    chords = jnp.stack(
        [jnp.arange(0, n, step), (jnp.arange(0, n, step) + n // 2) % n], axis=1)
    return jnp.concatenate([ring, chords], axis=0).astype(jnp.int32)


if __name__ == "__main__":
    key = jax.random.PRNGKey(0)
    kx, kh, ko, kx2 = jax.random.split(key, 4)

    # Small shapes consistent with the module: N nodes, sz_in -> sz_hid -> sz_out.
    N, SZ_IN, SZ_HID, SZ_OUT = 16, 128, 32, 7
    x = jax.random.normal(kx, (N, SZ_IN), jnp.float32)
    # PyTorch Linear layout: [out_features, in_features]
    w_hidden = jax.random.normal(kh, (SZ_HID, SZ_IN), jnp.float32) * 0.05
    w_out = jax.random.normal(ko, (SZ_OUT, SZ_HID), jnp.float32) * 0.05
    edges = _ring_edges(N)
    node_graph_ind = jnp.zeros((N,), jnp.int32)  # unused by forward (parity only)

    # --- small graph: fused single-kernel path ---
    out = jax.block_until_ready(gcn_forward(x, edges, w_hidden, w_out))
    ref = _reference(x, edges, w_hidden, w_out)
    assert out.shape == (N, SZ_OUT)
    # bf16 MXU operands + approx reciprocal -> bf16-level tolerance.
    assert jnp.allclose(out, ref, atol=2e-2, rtol=2e-2), (
        f"fused path max abs err {jnp.max(jnp.abs(out - ref))}")

    # --- larger graph: exercise the tiled multi-block path (incl. padding fix) ---
    N2 = 300
    x2 = jax.random.normal(kx2, (N2, SZ_IN), jnp.float32)
    edges2 = _ring_edges(N2)
    out2 = jax.block_until_ready(
        gcn_forward(x2, edges2, w_hidden, w_out, tm=128, tk=128, mode="tiled"))
    ref2 = _reference(x2, edges2, w_hidden, w_out)
    assert out2.shape == (N2, SZ_OUT)
    assert jnp.allclose(out2, ref2, atol=2e-2, rtol=2e-2), (
        f"tiled path max abs err {jnp.max(jnp.abs(out2 - ref2))}")

    print("KERNEL_OK")
</pallas_src>

<mosaic_0001>
module attributes {stable_mosaic.version = 11 : i64} {
  func.func @fused_gcn_kernel(%arg0: memref<128x128xi8, #tpu.memory_space<vmem>>, %arg1: memref<128x128xbf16, #tpu.memory_space<vmem>>, %arg2: memref<128x128xbf16, #tpu.memory_space<vmem>>, %arg3: memref<128x128xbf16, #tpu.memory_space<vmem>>, %arg4: memref<128x128xf32, #tpu.memory_space<vmem>>) attributes {dimension_semantics = [], scalar_prefetch = 0 : i64, scratch_operands = 0 : i64, tpu.core_type = #tpu.core_type<tc>} {
    %c0 = arith.constant 0 : index
    %c0_0 = arith.constant 0 : index
    %0 = vector.load %arg0[%c0, %c0_0] : memref<128x128xi8, #tpu.memory_space<vmem>>, vector<128x128xi8>
    %1 = arith.sitofp %0 : vector<128x128xi8> to vector<128x128xbf16>
    %2 = arith.extf %1 : vector<128x128xbf16> to vector<128x128xf32>
    %cst = arith.constant dense<0.000000e+00> : vector<128xf32>
    %3 = vector.multi_reduction <add>, %2, %cst [1] : vector<128x128xf32> to vector<128xf32>
    %4 = vector.shape_cast %3 : vector<128xf32> to vector<128x1xf32>
    %cst_1 = arith.constant 1.000000e+00 : f32
    %5 = vector.broadcast %cst_1 : f32 to vector<128x1xf32>
    %6 = arith.maximumf %4, %5 : vector<128x1xf32>
    %7 = tpu.reciprocal %6 {approx = true} : vector<128x1xf32> -> vector<128x1xf32>
    %c0_2 = arith.constant 0 : index
    %c0_3 = arith.constant 0 : index
    %8 = vector.load %arg1[%c0_2, %c0_3] : memref<128x128xbf16, #tpu.memory_space<vmem>>, vector<128x128xbf16>
    %c0_4 = arith.constant 0 : index
    %c0_5 = arith.constant 0 : index
    %9 = vector.load %arg2[%c0_4, %c0_5] : memref<128x128xbf16, #tpu.memory_space<vmem>>, vector<128x128xbf16>
    %cst_6 = arith.constant dense<0.000000e+00> : vector<128x128xf32>
    %10 = tpu.matmul %8, %9, %cst_6 {dimension_numbers = #tpu.dot_dimension_numbers<[1], [0], [0], [1], [0, 0, 1, 1], [], []>} : vector<128x128xbf16>, vector<128x128xbf16>, vector<128x128xf32> -> vector<128x128xf32>
    %11 = arith.truncf %10 : vector<128x128xf32> to vector<128x128xbf16>
    %cst_7 = arith.constant dense<0.000000e+00> : vector<128x128xf32>
    %12 = tpu.matmul %1, %11, %cst_7 {dimension_numbers = #tpu.dot_dimension_numbers<[1], [0], [0], [1], [0, 0, 1, 1], [], []>} : vector<128x128xbf16>, vector<128x128xbf16>, vector<128x128xf32> -> vector<128x128xf32>
    %13 = vector.broadcast %7 : vector<128x1xf32> to vector<128x128xf32>
    %14 = arith.mulf %12, %13 : vector<128x128xf32>
    %15 = arith.truncf %14 : vector<128x128xf32> to vector<128x128xbf16>
    %c0_8 = arith.constant 0 : index
    %c0_9 = arith.constant 0 : index
    %16 = vector.load %arg3[%c0_8, %c0_9] : memref<128x128xbf16, #tpu.memory_space<vmem>>, vector<128x128xbf16>
    %cst_10 = arith.constant dense<0.000000e+00> : vector<128x128xf32>
    %17 = tpu.matmul %15, %16, %cst_10 {dimension_numbers = #tpu.dot_dimension_numbers<[1], [0], [0], [1], [0, 0, 1, 1], [], []>} : vector<128x128xbf16>, vector<128x128xbf16>, vector<128x128xf32> -> vector<128x128xf32>
    %18 = arith.truncf %17 : vector<128x128xf32> to vector<128x128xbf16>
    %cst_11 = arith.constant dense<0.000000e+00> : vector<128x128xf32>
    %19 = tpu.matmul %1, %18, %cst_11 {dimension_numbers = #tpu.dot_dimension_numbers<[1], [0], [0], [1], [0, 0, 1, 1], [], []>} : vector<128x128xbf16>, vector<128x128xbf16>, vector<128x128xf32> -> vector<128x128xf32>
    %20 = vector.broadcast %7 : vector<128x1xf32> to vector<128x128xf32>
    %21 = arith.mulf %19, %20 : vector<128x128xf32>
    %c0_12 = arith.constant 0 : index
    %c0_13 = arith.constant 0 : index
    %22 = vector.load %arg4[%c0_12, %c0_13] : memref<128x128xf32, #tpu.memory_space<vmem>>, vector<128x128xf32>
    tpu.vector_store %arg4[%c0_12, %c0_13], %21 {strides = array<i32>} : memref<128x128xf32, #tpu.memory_space<vmem>>, vector<128x128xf32>,
    return
  }
}

</mosaic_0001>

<bundles_post_ra>
// kernel: tpu_custom_call.1
= control target key start
LH: loop header
LB: loop body
LE: loop exit
PB: predicated region body
PF: predicated region fallthrough
CT: control target
= control target key end

     0   :  { %9 = vsyncpa [#allocation3], 0  ;;  %s1402_s0 = inlined_call_operand.hbm [shape: s8[128,128], index: 0, kind: input, shape index: {}]   ;;  %s1403_s1 = inlined_call_operand.hbm [shape: bf16[128,128], index: 1, kind: input, shape index: {}]   ;;  %s1404_s2 = inlined_call_operand.hbm [shape: bf16[128,128], index: 2, kind: input, shape index: {}]   ;;  %s1405_s3 = inlined_call_operand.hbm [shape: bf16[128,128], index: 3, kind: input, shape index: {}]   ;;  %s1406_s4 = inlined_call_operand.hbm [shape: f32[128,128], index: 4, kind: output, shape index: {}]  }
   0x1   :  { %10 = vsyncpa [#allocation6], 0 }
   0x2   :  { %11 = vsyncpa [#allocation9], 0 }
   0x3   :  { %12 = vsyncpa [#allocation4], 0  ;;  %s1226_s15 = smov [#allocation5]  }
   0x4   :  { %s30_s16 = sshll.u32 %s1226_s15, 4  ;;  %s31_s16 = int_to_ptr.vmem [resolvable:$true] %s30_s16 }
   0x5   :  { %s1126_s17 = scalar_lea.vmem %s31_s16, 1024  ;;  %p1131_p1 = scmp.lt.s32.totalorder %s31_s16, %s31_s16 }
   0x6   :  { %p1127_p0 = scmp.ne.s32.totalorder %s31_s16, %s1126_s17  ;;  %p1132_p2 = scmp.lt.s32.totalorder %s1126_s17, %s1126_s17 }
   0x8   :  { %p1133_p3 = por %p1132_p2, %p1131_p1 }
   0xa   :  { %p1134_p4 = pnand %p1133_p3, %p1127_p0 }
   0xc   :  { %1137 = shalt.err (!%p1134_p4)
}
   0xd   :  { %s1227_s18 = smov 64   ;;  %s1228_s19 = smov 4  }
   0xe   :  { %36 = dma.hbm_to_vmem [thread:$0]  %s1403_s1, 1024, %s31_s16, [#allocation6], %s1227_s18, %s1227_s18, %s1228_s19  }
   0xf   :  { %s1229_s22 = smov [#allocation2]  }
  0x10   :  { %s18_s23 = sshll.u32 %s1229_s22, 4  ;;  %s19_s23 = int_to_ptr.vmem [resolvable:$true] %s18_s23 }
  0x11   :  { %s1146_s24 = scalar_lea.vmem %s19_s23, 512  ;;  %p1151_p6 = scmp.lt.s32.totalorder %s19_s23, %s19_s23 }
  0x12   :  { %p1147_p5 = scmp.ne.s32.totalorder %s19_s23, %s1146_s24  ;;  %p1152_p7 = scmp.lt.s32.totalorder %s1146_s24, %s1146_s24 }
  0x14   :  { %p1153_p8 = por %p1152_p7, %p1151_p6 }
  0x16   :  { %p1154_p9 = pnand %p1153_p8, %p1147_p5 }
  0x18   :  { %1157 = shalt.err (!%p1154_p9)
}
  0x19   :  { %s1230_s25 = smov 128   ;;  %s1231_s26 = smov 8  }
  0x1a   :  { %24 = dma.hbm_to_vmem [thread:$0]  %s1402_s0, 512, %s19_s23, [#allocation3], %s1230_s25, %s1230_s25, %s1231_s26  }
  0x1b   :  { %s1232_s1 = smov [#allocation7]   ;;  %s1233_s30 = smov [#allocation8]  }
  0x1c   :  { %s42_s29 = sshll.u32 %s1232_s1, 4  ;;  %s54_s5 = sshll.u32 %s1233_s30, 4  ;;  %s43_s29 = int_to_ptr.vmem [resolvable:$true] %s42_s29  ;;  %s55_s5 = int_to_ptr.vmem [resolvable:$true] %s54_s5 }
  0x1d   :  { %s1166_s6 = scalar_lea.vmem %s43_s29, 1024  ;;  %p1171_p11 = scmp.lt.s32.totalorder %s43_s29, %s43_s29 }
  0x1e   :  { %p1167_p10 = scmp.ne.s32.totalorder %s43_s29, %s1166_s6  ;;  %p1172_p12 = scmp.lt.s32.totalorder %s1166_s6, %s1166_s6 }
  0x20   :  { %p1173_p13 = por %p1172_p12, %p1171_p11 }
  0x22   :  { %p1174_p0 = pnand %p1173_p13, %p1167_p10 }
  0x24   :  { %1177 = shalt.err (!%p1174_p0)
}
  0x25   :  { %48 = dma.hbm_to_vmem [thread:$0]  %s1404_s2, 1024, %s43_s29, [#allocation6], %s1227_s18, %s1227_s18, %s1228_s19  }
  0x26   :  { %s1186_s0 = scalar_lea.vmem %s55_s5, 1024  ;;  %p1191_p2 = scmp.lt.s32.totalorder %s55_s5, %s55_s5 }
  0x27   :  { %p1187_p1 = scmp.ne.s32.totalorder %s55_s5, %s1186_s0  ;;  %p1192_p3 = scmp.lt.s32.totalorder %s1186_s0, %s1186_s0 }
  0x29   :  { %p1193_p4 = por %p1192_p3, %p1191_p2 }
  0x2b   :  { %p1194_p5 = pnand %p1193_p4, %p1187_p1 }
  0x2d   :  { %1197 = shalt.err (!%p1194_p5)
}
  0x2e   :  { %60 = dma.hbm_to_vmem [thread:$0]  %s1405_s3, 1024, %s55_s5, [#allocation9], %s1227_s18, %s1227_s18, %s1228_s19  }
  0x2f   :  { %1218 = dma.done.wait [#allocation3], 512  }
  0x30   :  { %1219 = vsyncadd [#allocation3], 4294966784 }
  0x31   :  { %1220 = dma.done.wait [#allocation6], 2048  }
  0x32   :  { %1221 = vsyncadd [#allocation6], 4294965248 }
  0x33   :  { %1222 = dma.done.wait [#allocation9], 1024  }
  0x34   :  { %1223 = vsyncadd [#allocation9], 4294966272  ;;  %v1062_v0 = vld [vmem:[#allocation7 + $0x38] sm:$0xff]   ;;  %v1063_v1 = vld [vmem:[#allocation7 + $0x30] sm:$0xff]   ;;  %s1234_s2 = smov [#allocation10]  }
  0x35   :  { %925 = vmatprep.subr.bf16.mxu0 %v1062_v0  ;;  %v1064_v2 = vld [vmem:[#allocation7 + $0x28] sm:$0xff]   ;;  %v1065_v3 = vld [vmem:[#allocation7 + $0x20] sm:$0xff]   ;;  %v1066_v5 = vld [vmem:[#allocation7 + $0x18] sm:$0xff]   ;;  %s823_s3 = sshll.u32 %s1234_s2, 4  ;;  %s824_s3 = int_to_ptr.vmem [resolvable:$true] %s823_s3 }
  0x36   :  { %926 = vmatpush3.bf16.msra.mxu0 %v1062_v0  ;;  %v1070_v4 = vld [vmem:[#allocation5] sm:$0xff]   ;;  %v1067_v6 = vld [vmem:[#allocation7 + $0x10] sm:$0xff]   ;;  %v1068_v7 = vld [vmem:[#allocation7 + $0x8] sm:$0xff]   ;;  %s1198_s11 = scalar_lea.vmem %s824_s3, 2048  ;;  %p1203_p7 = scmp.lt.s32.totalorder %s824_s3, %s824_s3 }
  0x37   :  { %927 = vmatprep.subr.bf16.mxu0 %v1063_v1  ;;  %941 = vmatprep.mubr.bf16.mxu0 %v1070_v4  ;;  %v1069_v8 = vld [vmem:[#allocation7] sm:$0xff]   ;;  %v1071_v9 = vld [vmem:[#allocation5 + $0x8] sm:$0xff]   ;;  %v1072_v10 = vld [vmem:[#allocation5 + $0x10] sm:$0xff]   ;;  %p1199_p6 = scmp.ne.s32.totalorder %s824_s3, %s1198_s11  ;;  %p1204_p8 = scmp.lt.s32.totalorder %s1198_s11, %s1198_s11 }
  0x38   :  { %v1073_v11 = vld [vmem:[#allocation5 + $0x18] sm:$0xff]   ;;  %v1074_v12 = vld [vmem:[#allocation5 + $0x20] sm:$0xff]   ;;  %v1075_v13 = vld [vmem:[#allocation5 + $0x28] sm:$0xff]  }
  0x39   :  { %v1076_v14 = vld [vmem:[#allocation5 + $0x30] sm:$0xff]   ;;  %v1077_v15 = vld [vmem:[#allocation5 + $0x38] sm:$0xff]   ;;  %v74_v16 = vld [vmem:[#allocation2] sm:$0xff]  ;;  %p1205_p9 = por %p1204_p8, %p1203_p7 }
  0x3a   :  { %928 = vmatpush3.bf16.msra.mxu0 %v1063_v1  ;;  %v1284_v17 = vunpack.c.l.s8.bf16 %v74_v16  ;;  %v1287_v18 = vunpack.c.h.s8.bf16 %v74_v16  ;;  %v1078_v21 = vld [vmem:[#allocation8 + $0x38] sm:$0xff]   ;;  %v75_v22 = vld [vmem:[#allocation2 + $0x8] sm:$0xff]  ;;  %v76_v29 = vld [vmem:[#allocation2 + $0x10] sm:$0xff] }
  0x3b   :  { %929 = vmatprep.subr.bf16.mxu0 %v1064_v2  ;;  %v1293_v25 = vunpack.c.l.s8.bf16 %v75_v22  ;;  %v1297_v28 = vunpack.c.h.s8.bf16 %v75_v22  ;;  %v1301_v32 = vunpack.c.l.s8.bf16 %v76_v29  ;;  %v1079_v35 = vld [vmem:[#allocation8 + $0x30] sm:$0xff]   ;;  %v1305_v36 = vunpack.c.h.s8.bf16 %v76_v29  ;;  %v77_v37 = vld [vmem:[#allocation2 + $0x18] sm:$0xff]  ;;  %v1080_v40 = vld [vmem:[#allocation8 + $0x28] sm:$0xff]   ;;  %p1206_p10 = pnand %p1205_p9, %p1199_p6 }
  0x3c   :  { %973 = vmatprep.mubr.bf16.mxu1 %v1284_v17  ;;  %v86_v19 = vunpack.c.l.bf16 %v1284_v17  ;;  %v88_v20 = vunpack.c.l.bf16 %v1287_v18  ;;  %v87_v23 = vunpack.c.h.bf16 %v1284_v17  ;;  %v89_v24 = vunpack.c.h.bf16 %v1287_v18  ;;  %v1081_v44 = vld [vmem:[#allocation8 + $0x20] sm:$0xff]   ;;  %v1082_v48 = vld [vmem:[#allocation8 + $0x18] sm:$0xff]   ;;  %v1083_v49 = vld [vmem:[#allocation8 + $0x10] sm:$0xff]  }
  0x3d   :  { %v90_v26 = vunpack.c.l.bf16 %v1293_v25  ;;  %v91_v27 = vunpack.c.h.bf16 %v1293_v25  ;;  %v92_v30 = vunpack.c.l.bf16 %v1297_v28  ;;  %v93_v31 = vunpack.c.h.bf16 %v1297_v28 }
  0x3e   :  { %930 = vmatpush3.bf16.msra.mxu0 %v1064_v2  ;;  %102 = vadd.xlane.f32.xlu0 %v86_v19  ;;  %v94_v33 = vunpack.c.l.bf16 %v1301_v32  ;;  %v95_v34 = vunpack.c.h.bf16 %v1301_v32  ;;  %v96_v38 = vunpack.c.l.bf16 %v1305_v36  ;;  %v97_v39 = vunpack.c.h.bf16 %v1305_v36 }
  0x3f   :  { %931 = vmatprep.subr.bf16.mxu0 %v1065_v3  ;;  %106 = vadd.xlane.f32.xlu1 %v88_v20  ;;  %v1309_v41 = vunpack.c.l.s8.bf16 %v77_v37  ;;  %v1313_v45 = vunpack.c.h.s8.bf16 %v77_v37 }
  0x41   :  { %v98_v42 = vunpack.c.l.bf16 %v1309_v41  ;;  %v99_v43 = vunpack.c.h.bf16 %v1309_v41  ;;  %v100_v46 = vunpack.c.l.bf16 %v1313_v45  ;;  %v101_v47 = vunpack.c.h.bf16 %v1313_v45 }
  0x42   :  { %932 = vmatpush3.bf16.msra.mxu0 %v1065_v3  ;;  %104 = vadd.xlane.f32.xlu0 %v87_v23 }
  0x43   :  { %933 = vmatprep.subr.bf16.mxu0 %v1066_v5  ;;  %108 = vadd.xlane.f32.xlu1 %v89_v24 }
  0x46   :  { %934 = vmatpush3.bf16.msra.mxu0 %v1066_v5  ;;  %110 = vadd.xlane.f32.xlu0 %v90_v26 }
  0x47   :  { %935 = vmatprep.subr.bf16.mxu0 %v1067_v6  ;;  %112 = vadd.xlane.f32.xlu1 %v91_v27 }
  0x4a   :  { %936 = vmatpush3.bf16.msra.mxu0 %v1067_v6  ;;  %114 = vadd.xlane.f32.xlu0 %v92_v30 }
  0x4b   :  { %937 = vmatprep.subr.bf16.mxu0 %v1068_v7  ;;  %116 = vadd.xlane.f32.xlu1 %v93_v31 }
  0x4e   :  { %938 = vmatpush3.bf16.msra.mxu0 %v1068_v7  ;;  %118 = vadd.xlane.f32.xlu0 %v94_v33 }
  0x4f   :  { %939 = vmatprep.subr.bf16.mxu0 %v1069_v8  ;;  %120 = vadd.xlane.f32.xlu1 %v95_v34 }
  0x52   :  { %940 = vmatpush3.bf16.msra.mxu0 %v1069_v8  ;;  %122 = vadd.xlane.f32.xlu0 %v96_v38 }
  0x53   :  { %989 = vmatprep.subr.bf16.mxu0 %v1078_v21  ;;  %124 = vadd.xlane.f32.xlu1 %v97_v39 }
  0x55   :  { %942 = vmatmul.mubr.bf16.vlgmr.msra.gmra.mxu0 %v1071_v9 }
  0x56   :  { %945 = vmatprep.mubr.bf16.mxu0 %v1072_v10  ;;  %990 = vmatpush3.bf16.msra.mxu0 %v1078_v21  ;;  %v1084_v10 = vld [vmem:[#allocation8 + $0x8] sm:$0xff]  }
  0x57   :  { %991 = vmatprep.subr.bf16.mxu0 %v1079_v35  ;;  %126 = vadd.xlane.f32.xlu0 %v98_v42 }
  0x58   :  { %128 = vadd.xlane.f32.xlu1 %v99_v43 }
  0x5a   :  { %992 = vmatpush3.bf16.msra.mxu0 %v1079_v35 }
  0x5b   :  { %993 = vmatprep.subr.bf16.mxu0 %v1080_v40  ;;  %130 = vadd.xlane.f32.xlu0 %v100_v46 }
  0x5c   :  { %132 = vadd.xlane.f32.xlu1 %v101_v47 }
  0x5d   :  { %946 = vmatmul.mubr.bf16.gmra.mxu0 %v1073_v11  ;;  %v1085_v11 = vld [vmem:[#allocation8] sm:$0xff]  }
  0x5e   :  { %949 = vmatprep.mubr.bf16.mxu0 %v1074_v12  ;;  %994 = vmatpush3.bf16.msra.mxu0 %v1080_v40 }
  0x5f   :  { %995 = vmatprep.subr.bf16.mxu0 %v1081_v44 }
  0x62   :  { %996 = vmatpush3.bf16.msra.mxu0 %v1081_v44 }
  0x63   :  { %997 = vmatprep.subr.bf16.mxu0 %v1082_v48 }
  0x65   :  { %950 = vmatmul.mubr.bf16.gmra.mxu0 %v1075_v13 }
  0x66   :  { %953 = vmatprep.mubr.bf16.mxu0 %v1076_v14  ;;  %998 = vmatpush3.bf16.msra.mxu0 %v1082_v48 }
  0x67   :  { %999 = vmatprep.subr.bf16.mxu0 %v1083_v49 }
  0x6a   :  { %1000 = vmatpush3.bf16.msra.mxu0 %v1083_v49 }
  0x6b   :  { %1001 = vmatprep.subr.bf16.mxu0 %v1084_v10 }
  0x6d   :  { %954 = vmatmul.mubr.bf16.gmra.mxu0 %v1077_v15 }
  0x6e   :  { %1002 = vmatpush3.bf16.msra.mxu0 %v1084_v10 }
  0x6f   :  { %1003 = vmatprep.subr.bf16.mxu0 %v1085_v11 }
  0x72   :  { %1004 = vmatpush3.bf16.msra.mxu0 %v1085_v11 }
  0xc7   :  { %v103_v13 = vpop.xlane.xlu0 %102 }
  0xc8   :  { %v107_v12 = vpop.xlane.xlu1 %106  ;;  %v134_v21 = vmax.f32 %v103_v13, 1.0 }
  0xc9   :  { %v136_v26 = vmax.f32 %v107_v12, 1.0 }
  0xca   :  { %1086 = vrcp.f32 %v134_v21 }
  0xcb   :  { %v105_v15 = vpop.xlane.xlu0 %104 }
  0xcc   :  { %v109_v14 = vpop.xlane.xlu1 %108  ;;  %v135_v24 = vmax.f32 %v105_v15, 1.0 }
  0xcd   :  { %v137_v23 = vmax.f32 %v109_v14, 1.0 }
  0xcf   :  { %v111_v19 = vpop.xlane.xlu0 %110  ;;  %1088 = vrcp.f32 %v137_v23 }
  0xd0   :  { %v113_v16 = vpop.xlane.xlu1 %112  ;;  %1090 = vrcp.f32 %v135_v24  ;;  %v138_v30 = vmax.f32 %v111_v19, 1.0 }
  0xd1   :  { %1092 = vrcp.f32 %v136_v26  ;;  %v139_v34 = vmax.f32 %v113_v16, 1.0 }
  0xd3   :  { %v115_v22 = vpop.xlane.xlu0 %114 }
  0xd4   :  { %v117_v20 = vpop.xlane.xlu1 %116  ;;  %v140_v33 = vmax.f32 %v115_v22, 1.0 }
  0xd5   :  { %v141_v29 = vmax.f32 %v117_v20, 1.0 }
  0xd7   :  { %v119_v27 = vpop.xlane.xlu0 %118  ;;  %1094 = vrcp.f32 %v141_v29  ;;  %v1325_v39 = vpop.eup %1086 }
  0xd8   :  { %1096 = vrcp.f32 %v138_v30  ;;  %v142_v44 = vmax.f32 %v119_v27, 1.0 }
  0xd9   :  { %1098 = vrcp.f32 %v140_v33 }
  0xda   :  { %1100 = vrcp.f32 %v139_v34 }
  0xdb   :  { %v123_v35 = vpop.xlane.xlu0 %122 }
  0xdc   :  { %v1327_v43 = vpop.eup %1088  ;;  %v144_v48 = vmax.f32 %v123_v35, 1.0 }
  0xdd   :  { %v1329_v47 = vpop.eup %1090 }
  0xe0   :  { %v127_v46 = vpop.xlane.xlu0 %126 }
 0x115   :  { %v943_v50 = vpop.f32.mrf.mxu0 }
 0x117   :  { %v328_v51 = vpop.f32.mrf.mxu0 }
 0x119   :  { %v944_v52 = vpop.f32.mrf.mxu0 }
 0x11a   :  { %v392_v8 = vpack.c.bf16 %v944_v52, %v943_v50  ;;  %v1331_v50 = vpop.eup %1092 }
 0x11b   :  { %v331_v53 = vpop.f32.mrf.mxu0 }
 0x11c   :  { %v391_v9 = vpack.c.bf16 %v331_v53, %v328_v51 }
 0x11d   :  { %v947_v54 = vpop.f32.mrf.mxu0 }
 0x11f   :  { %v344_v55 = vpop.f32.mrf.mxu0 }
 0x121   :  { %v948_v56 = vpop.f32.mrf.mxu0 }
 0x122   :  { %v394_v6 = vpack.c.bf16 %v948_v56, %v947_v54 }
 0x123   :  { %v347_v57 = vpop.f32.mrf.mxu0 }
 0x124   :  { %v393_v7 = vpack.c.bf16 %v347_v57, %v344_v55 }
 0x125   :  { %v951_v58 = vpop.f32.mrf.mxu0 }
 0x127   :  { %v360_v59 = vpop.f32.mrf.mxu0 }
 0x129   :  { %v952_v60 = vpop.f32.mrf.mxu0 }
 0x12a   :  { %v396_v4 = vpack.c.bf16 %v952_v60, %v951_v58  ;;  %v131_v60 = vpop.xlane.xlu0 %130 }
 0x12b   :  { %v363_v61 = vpop.f32.mrf.mxu0 }
 0x12c   :  { %v395_v5 = vpack.c.bf16 %v363_v61, %v360_v59 }
 0x12d   :  { %v955_v62 = vpop.f32.mrf.mxu0 }
 0x12f   :  { %v376_v63 = vpop.f32.mrf.mxu0 }
 0x131   :  { %v956_v0 = vpop.f32.mrf.mxu0 }
 0x132   :  { %v398_v1 = vpack.c.bf16 %v956_v0, %v955_v62  ;;  %v1337_v0 = vpop.eup %1094 }
 0x133   :  { %v379_v2 = vpop.f32.mrf.mxu0 }
 0x134   :  { %v397_v3 = vpack.c.bf16 %v379_v2, %v376_v63  ;;  %957 = vmatprep.subr.bf16.mxu1 %v398_v1  ;;  %v1339_v2 = vpop.eup %1096 }
 0x135   :  { %958 = vmatpush3.bf16.msra.mxu1 %v398_v1  ;;  %v146_v1 = vmax.f32 %v127_v46, 1.0 }
 0x136   :  { %959 = vmatprep.subr.bf16.mxu1 %v397_v3 }
 0x139   :  { %960 = vmatpush3.bf16.msra.mxu1 %v397_v3  ;;  %v148_v3 = vmax.f32 %v131_v60, 1.0 }
 0x13a   :  { %961 = vmatprep.subr.bf16.mxu1 %v396_v4 }
 0x13d   :  { %962 = vmatpush3.bf16.msra.mxu1 %v396_v4 }
 0x13e   :  { %963 = vmatprep.subr.bf16.mxu1 %v395_v5 }
 0x141   :  { %964 = vmatpush3.bf16.msra.mxu1 %v395_v5  ;;  %v1341_v5 = vpop.eup %1098 }
 0x142   :  { %965 = vmatprep.subr.bf16.mxu1 %v394_v6 }
 0x145   :  { %966 = vmatpush3.bf16.msra.mxu1 %v394_v6 }
 0x146   :  { %967 = vmatprep.subr.bf16.mxu1 %v393_v7 }
 0x149   :  { %968 = vmatpush3.bf16.msra.mxu1 %v393_v7  ;;  %v1343_v7 = vpop.eup %1100 }
 0x14a   :  { %969 = vmatprep.subr.bf16.mxu1 %v392_v8 }
 0x14d   :  { %970 = vmatpush3.bf16.msra.mxu1 %v392_v8 }
 0x14e   :  { %971 = vmatprep.subr.bf16.mxu1 %v391_v9 }
 0x151   :  { %972 = vmatpush3.bf16.msra.mxu1 %v391_v9 }
 0x154   :  { %974 = vmatmul.mubr.bf16.vlgmr.msra.gmra.mxu1 %v1287_v18 }
 0x155   :  { %977 = vmatprep.mubr.bf16.mxu1 %v1293_v25 }
 0x15c   :  { %978 = vmatmul.mubr.bf16.gmra.mxu1 %v1297_v28 }
 0x15d   :  { %981 = vmatprep.mubr.bf16.mxu1 %v1301_v32 }
 0x164   :  { %982 = vmatmul.mubr.bf16.gmra.mxu1 %v1305_v36 }
 0x165   :  { %985 = vmatprep.mubr.bf16.mxu1 %v1309_v41 }
 0x16c   :  { %986 = vmatmul.mubr.bf16.gmra.mxu1 %v1313_v45 }
 0x16d   :  { %1037 = vmatprep.mubr.bf16.mxu1 %v1284_v17  ;;  %v121_v17 = vpop.xlane.xlu1 %120 }
 0x16e   :  { %v143_v51 = vmax.f32 %v121_v17, 1.0 }
 0x171   :  { %v125_v31 = vpop.xlane.xlu1 %124 }
 0x172   :  { %v145_v42 = vmax.f32 %v125_v31, 1.0 }
 0x174   :  { %1102 = vrcp.f32 %v145_v42 }
 0x175   :  { %v129_v38 = vpop.xlane.xlu1 %128  ;;  %1104 = vrcp.f32 %v142_v44 }
 0x176   :  { %1106 = vrcp.f32 %v144_v48  ;;  %v147_v6 = vmax.f32 %v129_v38, 1.0 }
 0x177   :  { %1108 = vrcp.f32 %v143_v51 }
 0x179   :  { %v133_v56 = vpop.xlane.xlu1 %132 }
 0x17a   :  { %v149_v63 = vmax.f32 %v133_v56, 1.0 }
 0x17c   :  { %1110 = vrcp.f32 %v149_v63 }
 0x17d   :  { %1112 = vrcp.f32 %v146_v1 }
 0x17e   :  { %1114 = vrcp.f32 %v148_v3 }
 0x17f   :  { %1116 = vrcp.f32 %v147_v6 }
 0x181   :  { %v1349_v19 = vpop.eup %1102 }
 0x182   :  { %v1351_v20 = vpop.eup %1104 }
 0x183   :  { %v1353_v22 = vpop.eup %1106 }
 0x184   :  { %v1355_v23 = vpop.eup %1108 }
 0x189   :  { %v1361_v35 = vpop.eup %1110 }
 0x214   :  { %v975_v37 = vpop.f32.mrf.mxu1 }
 0x215   :  { %v498_v57 = vmul.f32 %v1331_v50, %v975_v37  ;;  %v1363_v37 = vpop.eup %1112 }
 0x216   :  { %v433_v40 = vpop.f32.mrf.mxu1 }
 0x217   :  { %v496_v54 = vmul.f32 %v1325_v39, %v433_v40  ;;  %v1365_v40 = vpop.eup %1114 }
 0x218   :  { %v976_v49 = vpop.f32.mrf.mxu1  ;;  %v1367_v42 = vpop.eup %1116 }
 0x219   :  { %v499_v52 = vmul.f32 %v1327_v43, %v976_v49 }
 0x21a   :  { %v436_v53 = vpop.f32.mrf.mxu1 }
 0x21b   :  { %v497_v55 = vmul.f32 %v1329_v47, %v436_v53  ;;  %v513_v61 = vpack.c.bf16 %v499_v52, %v498_v57 }
 0x21c   :  { %v979_v58 = vpop.f32.mrf.mxu1 }
 0x21d   :  { %v512_v59 = vpack.c.bf16 %v497_v55, %v496_v54  ;;  %v502_v12 = vmul.f32 %v1341_v5, %v979_v58 }
 0x21e   :  { %v449_v62 = vpop.f32.mrf.mxu1 }
 0x21f   :  { %1005 = vmatprep.mubr.bf16.mxu0 %v512_v59  ;;  %v500_v10 = vmul.f32 %v1339_v2, %v449_v62 }
 0x220   :  { %v980_v4 = vpop.f32.mrf.mxu1  ;;  %1006 = vmatmul.mubr.bf16.vlgmr.msra.gmra.mxu0 %v513_v61 }
 0x221   :  { %v503_v8 = vmul.f32 %v1337_v0, %v980_v4 }
 0x222   :  { %v452_v9 = vpop.f32.mrf.mxu1 }
 0x223   :  { %v501_v11 = vmul.f32 %v1343_v7, %v452_v9  ;;  %v515_v15 = vpack.c.bf16 %v503_v8, %v502_v12 }
 0x224   :  { %v983_v13 = vpop.f32.mrf.mxu1 }
 0x225   :  { %v514_v14 = vpack.c.bf16 %v501_v11, %v500_v10  ;;  %v506_v29 = vmul.f32 %v1353_v22, %v983_v13 }
 0x226   :  { %v465_v16 = vpop.f32.mrf.mxu1 }
 0x227   :  { %1009 = vmatprep.mubr.bf16.mxu0 %v514_v14  ;;  %v504_v17 = vmul.f32 %v1351_v20, %v465_v16 }
 0x228   :  { %v984_v21 = vpop.f32.mrf.mxu1  ;;  %1010 = vmatmul.mubr.bf16.gmra.mxu0 %v515_v15 }
 0x229   :  { %v507_v24 = vmul.f32 %v1349_v19, %v984_v21 }
 0x22a   :  { %v468_v26 = vpop.f32.mrf.mxu1 }
 0x22b   :  { %v505_v27 = vmul.f32 %v1355_v23, %v468_v26  ;;  %v517_v33 = vpack.c.bf16 %v507_v24, %v506_v29 }
 0x22c   :  { %v987_v30 = vpop.f32.mrf.mxu1 }
 0x22d   :  { %v516_v31 = vpack.c.bf16 %v505_v27, %v504_v17  ;;  %v510_v51 = vmul.f32 %v1365_v40, %v987_v30 }
 0x22e   :  { %v481_v34 = vpop.f32.mrf.mxu1 }
 0x22f   :  { %1013 = vmatprep.mubr.bf16.mxu0 %v516_v31  ;;  %v508_v48 = vmul.f32 %v1363_v37, %v481_v34 }
 0x230   :  { %v988_v38 = vpop.f32.mrf.mxu1  ;;  %1014 = vmatmul.mubr.bf16.gmra.mxu0 %v517_v33 }
 0x231   :  { %v511_v44 = vmul.f32 %v1361_v35, %v988_v38 }
 0x232   :  { %v484_v46 = vpop.f32.mrf.mxu1 }
 0x233   :  { %v509_v49 = vmul.f32 %v1367_v42, %v484_v46  ;;  %v519_v53 = vpack.c.bf16 %v511_v44, %v510_v51 }
 0x235   :  { %v518_v52 = vpack.c.bf16 %v509_v49, %v508_v48 }
 0x237   :  { %1017 = vmatprep.mubr.bf16.mxu0 %v518_v52 }
 0x238   :  { %1018 = vmatmul.mubr.bf16.gmra.mxu0 %v519_v53 }
 0x2e0   :  { %v1007_v54 = vpop.f32.mrf.mxu0 }
 0x2e2   :  { %v618_v55 = vpop.f32.mrf.mxu0 }
 0x2e4   :  { %v1008_v56 = vpop.f32.mrf.mxu0 }
 0x2e5   :  { %v682_v16 = vpack.c.bf16 %v1008_v56, %v1007_v54 }
 0x2e6   :  { %v621_v57 = vpop.f32.mrf.mxu0 }
 0x2e7   :  { %v681_v21 = vpack.c.bf16 %v621_v57, %v618_v55 }
 0x2e8   :  { %v1011_v58 = vpop.f32.mrf.mxu0 }
 0x2ea   :  { %v634_v59 = vpop.f32.mrf.mxu0 }
 0x2ec   :  { %v1012_v60 = vpop.f32.mrf.mxu0 }
 0x2ed   :  { %v684_v14 = vpack.c.bf16 %v1012_v60, %v1011_v58 }
 0x2ee   :  { %v637_v61 = vpop.f32.mrf.mxu0 }
 0x2ef   :  { %v683_v15 = vpack.c.bf16 %v637_v61, %v634_v59 }
 0x2f0   :  { %v1015_v62 = vpop.f32.mrf.mxu0 }
 0x2f2   :  { %v650_v63 = vpop.f32.mrf.mxu0 }
 0x2f4   :  { %v1016_v1 = vpop.f32.mrf.mxu0 }
 0x2f5   :  { %v686_v12 = vpack.c.bf16 %v1016_v1, %v1015_v62 }
 0x2f6   :  { %v653_v3 = vpop.f32.mrf.mxu0 }
 0x2f7   :  { %v685_v13 = vpack.c.bf16 %v653_v3, %v650_v63 }
 0x2f8   :  { %v1019_v4 = vpop.f32.mrf.mxu0 }
 0x2fa   :  { %v666_v6 = vpop.f32.mrf.mxu0 }
 0x2fc   :  { %v1020_v8 = vpop.f32.mrf.mxu0 }
 0x2fd   :  { %v688_v9 = vpack.c.bf16 %v1020_v8, %v1019_v4 }
 0x2fe   :  { %v669_v10 = vpop.f32.mrf.mxu0 }
 0x2ff   :  { %v687_v11 = vpack.c.bf16 %v669_v10, %v666_v6  ;;  %1021 = vmatprep.subr.bf16.mxu1 %v688_v9 }
 0x300   :  { %1022 = vmatpush3.bf16.msra.mxu1 %v688_v9 }
 0x301   :  { %1023 = vmatprep.subr.bf16.mxu1 %v687_v11 }
 0x304   :  { %1024 = vmatpush3.bf16.msra.mxu1 %v687_v11 }
 0x305   :  { %1025 = vmatprep.subr.bf16.mxu1 %v686_v12 }
 0x308   :  { %1026 = vmatpush3.bf16.msra.mxu1 %v686_v12 }
 0x309   :  { %1027 = vmatprep.subr.bf16.mxu1 %v685_v13 }
 0x30c   :  { %1028 = vmatpush3.bf16.msra.mxu1 %v685_v13 }
 0x30d   :  { %1029 = vmatprep.subr.bf16.mxu1 %v684_v14 }
 0x310   :  { %1030 = vmatpush3.bf16.msra.mxu1 %v684_v14 }
 0x311   :  { %1031 = vmatprep.subr.bf16.mxu1 %v683_v15 }
 0x314   :  { %1032 = vmatpush3.bf16.msra.mxu1 %v683_v15 }
 0x315   :  { %1033 = vmatprep.subr.bf16.mxu1 %v682_v16 }
 0x318   :  { %1034 = vmatpush3.bf16.msra.mxu1 %v682_v16 }
 0x319   :  { %1035 = vmatprep.subr.bf16.mxu1 %v681_v21 }
 0x31c   :  { %1036 = vmatpush3.bf16.msra.mxu1 %v681_v21 }
 0x31f   :  { %1038 = vmatmul.mubr.bf16.vlgmr.msra.gmra.mxu1 %v1287_v18 }
 0x320   :  { %1041 = vmatprep.mubr.bf16.mxu1 %v1293_v25 }
 0x327   :  { %1042 = vmatmul.mubr.bf16.gmra.mxu1 %v1297_v28 }
 0x328   :  { %1045 = vmatprep.mubr.bf16.mxu1 %v1301_v32 }
 0x32f   :  { %1046 = vmatmul.mubr.bf16.gmra.mxu1 %v1305_v36 }
 0x330   :  { %1049 = vmatprep.mubr.bf16.mxu1 %v1309_v41 }
 0x337   :  { %1050 = vmatmul.mubr.bf16.gmra.mxu1 %v1313_v45 }
 0x3df   :  { %v1039_v24 = vpop.f32.mrf.mxu1 }
 0x3e0   :  { %v788_v26 = vmul.f32 %v1331_v50, %v1039_v24 }
 0x3e1   :  { %v723_v17 = vpop.f32.mrf.mxu1 }
 0x3e2   :  { %804 = vst [vmem:[#allocation10 + $0x10] sm:$0xff] %v788_v26  ;;  %v786_v27 = vmul.f32 %v1325_v39, %v723_v17 }
 0x3e3   :  { %v1040_v18 = vpop.f32.mrf.mxu1 }
 0x3e4   :  { %802 = vst [vmem:[#allocation10] sm:$0xff] %v786_v27  ;;  %v789_v25 = vmul.f32 %v1327_v43, %v1040_v18 }
 0x3e5   :  { %v726_v28 = vpop.f32.mrf.mxu1 }
 0x3e6   :  { %805 = vst [vmem:[#allocation10 + $0x18] sm:$0xff] %v789_v25  ;;  %v787_v32 = vmul.f32 %v1329_v47, %v726_v28 }
 0x3e7   :  { %v1043_v36 = vpop.f32.mrf.mxu1 }
 0x3e8   :  { %803 = vst [vmem:[#allocation10 + $0x8] sm:$0xff] %v787_v32  ;;  %v792_v41 = vmul.f32 %v1341_v5, %v1043_v36 }
 0x3e9   :  { %v739_v45 = vpop.f32.mrf.mxu1 }
 0x3ea   :  { %808 = vst [vmem:[#allocation10 + $0x30] sm:$0xff] %v792_v41  ;;  %v790_v50 = vmul.f32 %v1339_v2, %v739_v45 }
 0x3eb   :  { %v1044_v29 = vpop.f32.mrf.mxu1 }
 0x3ec   :  { %806 = vst [vmem:[#allocation10 + $0x20] sm:$0xff] %v790_v50  ;;  %v793_v39 = vmul.f32 %v1337_v0, %v1044_v29 }
 0x3ed   :  { %v742_v30 = vpop.f32.mrf.mxu1 }
 0x3ee   :  { %809 = vst [vmem:[#allocation10 + $0x38] sm:$0xff] %v793_v39  ;;  %v791_v43 = vmul.f32 %v1343_v7, %v742_v30 }
 0x3ef   :  { %v1047_v31 = vpop.f32.mrf.mxu1 }
 0x3f0   :  { %807 = vst [vmem:[#allocation10 + $0x28] sm:$0xff] %v791_v43  ;;  %v796_v47 = vmul.f32 %v1353_v22, %v1047_v31 }
 0x3f1   :  { %v755_v33 = vpop.f32.mrf.mxu1 }
 0x3f2   :  { %812 = vst [vmem:[#allocation10 + $0x50] sm:$0xff] %v796_v47  ;;  %v794_v5 = vmul.f32 %v1351_v20, %v755_v33 }
 0x3f3   :  { %v1048_v34 = vpop.f32.mrf.mxu1 }
 0x3f4   :  { %810 = vst [vmem:[#allocation10 + $0x40] sm:$0xff] %v794_v5  ;;  %v797_v2 = vmul.f32 %v1349_v19, %v1048_v34 }
 0x3f5   :  { %v758_v38 = vpop.f32.mrf.mxu1 }
 0x3f6   :  { %813 = vst [vmem:[#allocation10 + $0x58] sm:$0xff] %v797_v2  ;;  %v795_v0 = vmul.f32 %v1355_v23, %v758_v38 }
 0x3f7   :  { %v1051_v44 = vpop.f32.mrf.mxu1 }
 0x3f8   :  { %811 = vst [vmem:[#allocation10 + $0x48] sm:$0xff] %v795_v0  ;;  %v800_v7 = vmul.f32 %v1365_v40, %v1051_v44 }
 0x3f9   :  { %v771_v46 = vpop.f32.mrf.mxu1 }
 0x3fa   :  { %816 = vst [vmem:[#allocation10 + $0x70] sm:$0xff] %v800_v7  ;;  %v798_v22 = vmul.f32 %v1363_v37, %v771_v46 }
 0x3fb   :  { %v1052_v48 = vpop.f32.mrf.mxu1 }
 0x3fc   :  { %814 = vst [vmem:[#allocation10 + $0x60] sm:$0xff] %v798_v22  ;;  %v801_v20 = vmul.f32 %v1361_v35, %v1052_v48 }
 0x3fd   :  { %v774_v49 = vpop.f32.mrf.mxu1 }
 0x3fe   :  { %817 = vst [vmem:[#allocation10 + $0x78] sm:$0xff] %v801_v20  ;;  %v799_v19 = vmul.f32 %v1367_v42, %v774_v49 }
 0x400   :  { %815 = vst [vmem:[#allocation10 + $0x68] sm:$0xff] %v799_v19 }
 0x401   :  { %1209 = shalt.err (!%p1206_p10)
}
 0x402   :  { %829 = dma.vmem_to_hbm [thread:$0]  %s824_s3, 2048, %s1406_s4, [#allocation4], %s1230_s25, %s1230_s25, %s1231_s26  }
 0x403   :  { %1224 = dma.done.wait [#allocation4], 2048  }
 0x404   :  { %1225 = vsyncadd [#allocation4], 4294965248 }
 0x405   :  { %833 = vsyncpa [#allocation3], 1 }
 0x406   :  { %834 = vsyncpa [#allocation6], 1 }
 0x407   :  { %835 = vsyncpa [#allocation9], 1 }
 0x408   :  { %836 = vsyncpa [#allocation4], 1 }

</bundles_post_ra>
